<compile_context>
chip_gen: v5e
topology: v5e:2x2
jax: 0.10.0
libtpu: 0.0.40
codegen_flags: <defaults>
</compile_context>

<pallas_src>
import jax
import jax.numpy as jnp
from jax.experimental import pallas as pl
from jax.experimental.pallas import tpu as pltpu

_LANE = 128
_MAX_W = 8192


def _mish_kernel(x_ref, o_ref):
    x = x_ref[...].astype(jnp.float32)
    # mish(x) = x * tanh(softplus(x)) = x * t / (t + 2),  t = e^2 + 2e, e = exp(x).
    # Clamp the exponent so e^2 cannot overflow; for x > 20 the tanh factor is
    # already 1.0 to full f32 precision, so the clamp is exact.
    e = jnp.exp(jnp.minimum(x, 20.0))
    t = e * (e + 2.0)
    o_ref[...] = (x * (t / (t + 2.0))).astype(o_ref.dtype)


def _pick_width(n: int) -> int:
    """Largest multiple of 128 (<= _MAX_W) that divides n, or 0 if n % 128 != 0."""
    w = _MAX_W
    while w >= _LANE:
        if n % w == 0:
            return w
        w //= 2
    return 0


def mish(x: jax.Array, *, block_elems: int = 512 * 1024) -> jax.Array:
    """Elementwise Mish: x * tanh(softplus(x)). Any shape/dtype, PyTorch semantics."""
    orig_shape = x.shape
    orig_dtype = x.dtype
    n = x.size
    if n == 0:
        return x

    x_flat = jnp.ravel(x)
    W = _pick_width(n)
    padded = W == 0
    if padded:
        # Ragged element count: pad up to a multiple of 1024 (8 sublanes x 128 lanes).
        W = 8 * _LANE
        n_pad = ((n + W - 1) // W) * W
        x_flat = jnp.pad(x_flat, (0, n_pad - n))
    else:
        n_pad = n

    rows = n_pad // W
    # Sublane granularity: 8 for 4-byte dtypes, 16 for 2-byte (bf16), 32 for 1-byte.
    itemsize = jnp.dtype(orig_dtype).itemsize
    sub = max(8, 32 // max(itemsize, 1))

    # ~block_elems elements per block (~2 MiB f32). Either a multiple of `sub`
    # rows (Pallas masks a partial last block) or the full row extent.
    tr_target = max(1, block_elems // W)
    tr = min(rows, max(sub, (tr_target // sub) * sub))
    grid = (pl.cdiv(rows, tr),)

    x2d = x_flat.reshape(rows, W)

    out2d = pl.pallas_call(
        _mish_kernel,
        out_shape=jax.ShapeDtypeStruct((rows, W), orig_dtype),
        grid_spec=pltpu.PrefetchScalarGridSpec(
            num_scalar_prefetch=0,
            grid=grid,
            in_specs=[pl.BlockSpec((tr, W), lambda i: (i, 0))],
            out_specs=pl.BlockSpec((tr, W), lambda i: (i, 0)),
        ),
        compiler_params=pltpu.CompilerParams(
            dimension_semantics=("parallel",),
            vmem_limit_bytes=32 * 1024 * 1024,
        ),
    )(x2d)

    out_flat = out2d.reshape(-1)
    if padded:
        out_flat = out_flat[:n]
    return out_flat.reshape(orig_shape)


def mish_reference(x):
    xf = x.astype(jnp.float32)
    return (xf * jnp.tanh(jax.nn.softplus(xf))).astype(x.dtype)


if __name__ == "__main__":
    key = jax.random.PRNGKey(0)

    # Primary test: NCHW input matching the PyTorch module's usage.
    x = jax.random.normal(key, (2, 4, 16, 16), dtype=jnp.float32)
    y = jax.block_until_ready(mish(x))
    y_ref = mish_reference(x)
    assert y.shape == x.shape and y.dtype == x.dtype
    assert jnp.allclose(y, y_ref, atol=1e-5, rtol=1e-5), "f32 mismatch vs reference"

    k1, k2 = jax.random.split(key)

    # Ragged element count (exercises the pad fallback path).
    x_ragged = jax.random.normal(k1, (3, 5, 7, 11), dtype=jnp.float32)
    y_ragged = jax.block_until_ready(mish(x_ragged))
    assert jnp.allclose(y_ragged, mish_reference(x_ragged), atol=1e-5, rtol=1e-5)

    # Multi-block grid with a partial last block (small block override).
    x_big = jax.random.normal(k2, (1, 20, 64, 128), dtype=jnp.float32)
    y_big = jax.block_until_ready(mish(x_big, block_elems=64 * 1024))
    assert jnp.allclose(y_big, mish_reference(x_big), atol=1e-5, rtol=1e-5)

    # bf16 input (compute in f32, cast back).
    x_bf16 = x.astype(jnp.bfloat16)
    y_bf16 = jax.block_until_ready(mish(x_bf16))
    assert y_bf16.dtype == jnp.bfloat16
    assert jnp.allclose(
        y_bf16.astype(jnp.float32),
        mish_reference(x_bf16).astype(jnp.float32),
        atol=2e-2,
        rtol=2e-2,
    )

    print("KERNEL_OK")
</pallas_src>

<mosaic_0001>
module attributes {stable_mosaic.version = 11 : i64} {
  func.func @_mish_kernel(%arg0: i32, %arg1: memref<1x2048xf32, #tpu.memory_space<vmem>>, %arg2: memref<1x2048xf32, #tpu.memory_space<vmem>>) attributes {dimension_semantics = [#tpu.dimension_semantics<parallel>], iteration_bounds = array<i64: 1>, scalar_prefetch = 0 : i64, scratch_operands = 0 : i64, tpu.core_type = #tpu.core_type<tc>, window_params = [{transform_indices = @transform_0, window_bounds = array<i64: 1, 2048>}, {transform_indices = @transform_1, window_bounds = array<i64: 1, 2048>}]} {
    %c0 = arith.constant 0 : index
    %c0_0 = arith.constant 0 : index
    %0 = vector.load %arg1[%c0, %c0_0] : memref<1x2048xf32, #tpu.memory_space<vmem>>, vector<1x2048xf32>
    %cst = arith.constant 2.000000e+01 : f32
    %1 = vector.broadcast %cst : f32 to vector<1x2048xf32>
    %2 = arith.minimumf %0, %1 : vector<1x2048xf32>
    %3 = math.exp %2 : vector<1x2048xf32>
    %cst_1 = arith.constant 2.000000e+00 : f32
    %4 = vector.broadcast %cst_1 : f32 to vector<1x2048xf32>
    %5 = arith.addf %3, %4 : vector<1x2048xf32>
    %6 = arith.mulf %3, %5 : vector<1x2048xf32>
    %cst_2 = arith.constant 2.000000e+00 : f32
    %7 = vector.broadcast %cst_2 : f32 to vector<1x2048xf32>
    %8 = arith.addf %6, %7 : vector<1x2048xf32>
    %9 = arith.divf %6, %8 : vector<1x2048xf32>
    %10 = arith.mulf %0, %9 : vector<1x2048xf32>
    %c0_3 = arith.constant 0 : index
    %c0_4 = arith.constant 0 : index
    %11 = vector.load %arg2[%c0_3, %c0_4] : memref<1x2048xf32, #tpu.memory_space<vmem>>, vector<1x2048xf32>
    tpu.vector_store %arg2[%c0_3, %c0_4], %10 {strides = array<i32>} : memref<1x2048xf32, #tpu.memory_space<vmem>>, vector<1x2048xf32>,
    return
  }
  func.func @transform_0(%arg0: i32) -> (i32, i32) {
    %c0_i32 = arith.constant 0 : i32
    %c0_i32_0 = arith.constant 0 : i32
    return %arg0, %c0_i32 : i32, i32
  }
  func.func @transform_1(%arg0: i32) -> (i32, i32) {
    %c0_i32 = arith.constant 0 : i32
    %c0_i32_0 = arith.constant 0 : i32
    return %arg0, %c0_i32 : i32, i32
  }
}

</mosaic_0001>

<bundles_post_ra>
// kernel: tpu_custom_call.1
= control target key start
LH: loop header
LB: loop body
LE: loop exit
PB: predicated region body
PF: predicated region fallthrough
CT: control target
= control target key end

     0   :  { %6 = vsyncpa [#allocation3], 0  ;;  %s168_s0 = inlined_call_operand.hbm [shape: f32[1,2048], index: 0, kind: input, shape index: {}]   ;;  %s169_s1 = inlined_call_operand.hbm [shape: f32[1,2048], index: 1, kind: output, shape index: {}]  }
   0x1   :  { %7 = vsyncpa [#allocation4], 0  ;;  %s13_s8 = sshll.u32 %s168_s0, 4  ;;  %s150_s9 = smov [#allocation2]   ;;  %s14_s8 = int_to_ptr.hbm [resolvable:$true] %s13_s8 }
   0x2   :  { %s15_s10 = sshll.u32 %s150_s9, 4  ;;  %s16_s10 = int_to_ptr.vmem [resolvable:$true] %s15_s10 }
   0x3   :  { %18 = dma.hbm_to_vmem [thread:$0]  %s14_s8, 256, %s16_s10, [#allocation3]  }
   0x4   :  { %146 = dma.done.wait [#allocation3], 256  }
   0x5   :  { %147 = vsyncadd [#allocation3], 4294967040  ;;  %v23_v0 = vld [vmem:[#allocation2] sm:$0xff]  ;;  %v24_v1 = vld [vmem:[#allocation2 + $0x8] sm:$0xff]  ;;  %s151_s0 = smov [#allocation5]   ;;  %s78_s14 = sshll.u32 %s169_s1, 4  ;;  %s79_s14 = int_to_ptr.hbm [resolvable:$true] %s78_s14 }
   0x6   :  { %v25_v2 = vmin.f32 %v23_v0, 20.0  ;;  %v26_v3 = vmin.f32 %v24_v1, 20.0  ;;  %s76_s11 = sshll.u32 %s151_s0, 4  ;;  %s77_s11 = int_to_ptr.vmem [resolvable:$true] %s76_s11 }
   0x8   :  { %v27_v4 = vmul.f32 1.442695, %v25_v2  ;;  %v29_v5 = vmul.f32 1.442695, %v26_v3 }
   0xa   :  { %90 = vpow2.f32 %v27_v4 }
   0xb   :  { %92 = vpow2.f32 %v29_v5 }
  0x10   :  { %v91_v6 = vpop.eup %90 }
  0x11   :  { %v93_v7 = vpop.eup %92  ;;  %v31_v8 = vadd.f32 2.0, %v91_v6 }
  0x12   :  { %v32_v9 = vadd.f32 2.0, %v93_v7 }
  0x13   :  { %v33_v10 = vmul.f32 %v91_v6, %v31_v8 }
  0x14   :  { %v34_v11 = vmul.f32 %v93_v7, %v32_v9 }
  0x15   :  { %v35_v12 = vadd.f32 2.0, %v33_v10 }
  0x16   :  { %v36_v13 = vadd.f32 2.0, %v34_v11 }
  0x17   :  { %94 = vrcp.f32 %v35_v12  ;;  %vm42_vm0 = vweird.f32 %v35_v12  ;;  %v48_v17 = vand.u32 2147483648, %v35_v12  ;;  %v46_v20 = vand.u32 2147483647, %v35_v12 }
  0x18   :  { %96 = vrcp.f32 %v36_v13  ;;  %v63_v21 = vand.u32 2147483648, %v36_v13  ;;  %vm57_vm2 = vweird.f32 %v36_v13  ;;  %v61_v23 = vand.u32 2147483647, %v36_v13 }
  0x19   :  { %v49_v25 = vor.u32 1.1754944e-38, %v48_v17  ;;  %vm47_vm5 = vcmp.eq.f32.partialorder %v46_v20, 8.507059e+37 }
  0x1a   :  { %v64_v28 = vor.u32 1.1754944e-38, %v63_v21  ;;  %vm62_vm7 = vcmp.eq.f32.partialorder %v61_v23, 8.507059e+37 }
  0x1d   :  { %v95_v14 = vpop.eup %94 }
  0x1e   :  { %v97_v15 = vpop.eup %96  ;;  %v38_v16 = vmul.f32 %v95_v14, %v35_v12  ;;  %vm43_vm1 = vweird.f32 %v95_v14 }
  0x1f   :  { %v53_v18 = vmul.f32 %v97_v15, %v36_v13  ;;  %vm58_vm3 = vweird.f32 %v97_v15  ;;  %vm44_vm4 = vmor %vm42_vm0, %vm43_vm1 }
  0x20   :  { %v39_v19 = vsub.f32 1.0, %v38_v16  ;;  %vm59_vm6 = vmor %vm57_vm2, %vm58_vm3 }
  0x21   :  { %v54_v22 = vsub.f32 1.0, %v53_v18 }
  0x22   :  { %v40_v24 = vmul.f32 %v95_v14, %v39_v19 }
  0x23   :  { %v55_v26 = vmul.f32 %v97_v15, %v54_v22 }
  0x24   :  { %v41_v27 = vadd.f32 %v95_v14, %v40_v24 }
  0x25   :  { %v56_v29 = vadd.f32 %v97_v15, %v55_v26 }
  0x26   :  { %v45_v30 = vsel %vm44_vm4, %v95_v14, %v41_v27 }
  0x27   :  { %v50_v31 = vsel %vm47_vm5, %v49_v25, %v45_v30  ;;  %v60_v32 = vsel %vm59_vm6, %v97_v15, %v56_v29 }
  0x28   :  { %v51_v33 = vmul.f32 %v50_v31, %v33_v10  ;;  %v65_v34 = vsel %vm62_vm7, %v64_v28, %v60_v32 }
  0x29   :  { %v66_v35 = vmul.f32 %v65_v34, %v34_v11 }
  0x2a   :  { %v67_v36 = vmul.f32 %v51_v33, %v23_v0 }
  0x2b   :  { %v68_v37 = vmul.f32 %v66_v35, %v24_v1 }
  0x2c   :  { %69 = vst [vmem:[#allocation5] sm:$0xff] %v67_v36 }
  0x2d   :  { %70 = vst [vmem:[#allocation5 + $0x8] sm:$0xff] %v68_v37 }
  0x2e   :  { %81 = dma.vmem_to_hbm [thread:$0]  %s77_s11, 256, %s79_s14, [#allocation4]  }
  0x2f   :  { %148 = dma.done.wait [#allocation4], 256  }
  0x30   :  { %149 = vsyncadd [#allocation4], 4294967040 }
  0x31   :  { %86 = vsyncpa [#allocation3], 1 }
  0x32   :  { %87 = vsyncpa [#allocation4], 1 }

</bundles_post_ra>
